<compile_context>
chip_gen: v7x
topology: tpu7x:2x2x1
jax: 0.10.0
libtpu: 0.0.40
codegen_flags: <defaults>
</compile_context>

<pallas_src>
import jax
import jax.numpy as jnp
from jax.experimental import pallas as pl
from jax.experimental.pallas import tpu as pltpu

_LANES = 128


# --------------------------------------------------------------------------- #
# Init (deterministic equivalent of torch.nn.init.xavier_uniform_)            #
# --------------------------------------------------------------------------- #
def _xavier_uniform(key, shape, dtype=jnp.float32):
    fan_in, fan_out = shape[0], shape[1]
    limit = (6.0 / (fan_in + fan_out)) ** 0.5
    return jax.random.uniform(key, shape, dtype=dtype, minval=-limit, maxval=limit)


# --------------------------------------------------------------------------- #
# Lane-dense (rows, 128) packing helpers (wrapper-side, pure layout plumbing)  #
# --------------------------------------------------------------------------- #
def _to_lane_dense(x):
    """Flatten row-major and pad to a multiple of 128 -> (rows, 128) slab."""
    total = x.size
    flat = x.reshape(total)
    pad = (-total) % _LANES
    if pad:
        flat = jnp.pad(flat, (0, pad))
    return flat.reshape(-1, _LANES), total


def _from_lane_dense(y2d, total, shape):
    flat = y2d.reshape(-1)
    if flat.shape[0] != total:
        flat = flat[:total]
    return flat.reshape(shape)


def _default_tile_bytes():
    """~2 MiB tiles on v5e/v6e, ~4 MiB on v7x (higher HBM BW, fixed step cost)."""
    try:
        kind = jax.devices()[0].device_kind.lower()
    except Exception:
        return 2 * 1024 * 1024
    if "v7" in kind or "7x" in kind or "tpu7" in kind:
        return 4 * 1024 * 1024
    return 2 * 1024 * 1024


def _tile_rows(rows, itemsize, tile_bytes):
    bytes_per_row = _LANES * itemsize
    t = max(8, (tile_bytes // bytes_per_row) // 8 * 8)
    return min(t, rows)  # == rows -> full-extent block (always legal)


# --------------------------------------------------------------------------- #
# Fused tiled copy kernel (both tables, single launch)                         #
# --------------------------------------------------------------------------- #
def _fused_copy_kernel(u_ref, i_ref, uo_ref, io_ref):
    # Unconditional copies: with clamped index maps the input block always
    # holds the data belonging to the mapped output block, so every grid step
    # (including clamped "tail" steps on the shorter table) writes valid data.
    uo_ref[...] = u_ref[...]
    io_ref[...] = i_ref[...]


def mf_copy(user_emb, item_emb, *, tile_bytes=None):
    """Materialize fresh copies of both tables with one fused pallas_call."""
    if tile_bytes is None:
        tile_bytes = _default_tile_bytes()

    u2d, u_total = _to_lane_dense(user_emb)
    i2d, i_total = _to_lane_dense(item_emb)

    rows_u, rows_i = u2d.shape[0], i2d.shape[0]
    u_isz = jnp.dtype(u2d.dtype).itemsize
    i_isz = jnp.dtype(i2d.dtype).itemsize

    tu = _tile_rows(rows_u, u_isz, tile_bytes)
    ti = _tile_rows(rows_i, i_isz, tile_bytes)
    nu = pl.cdiv(rows_u, tu)
    ni = pl.cdiv(rows_i, ti)
    grid = (max(nu, ni),)

    # Clamp block indices for the table with fewer tiles; steps past its last
    # tile just redundantly re-copy the final tile (input DMA elided because
    # the block index is unchanged; writeback is identical data -> benign).
    u_map = lambda g: (jnp.minimum(g, nu - 1), 0)
    i_map = lambda g: (jnp.minimum(g, ni - 1), 0)

    # Real double-buffered footprint: (in + out) x 2 buffers per table.
    vmem_need = 4 * (tu * _LANES * u_isz + ti * _LANES * i_isz)
    vmem_limit = max(vmem_need + (4 << 20), 32 << 20)  # <= 36 MiB worst case

    uo2d, io2d = pl.pallas_call(
        _fused_copy_kernel,
        out_shape=(
            jax.ShapeDtypeStruct(u2d.shape, u2d.dtype),
            jax.ShapeDtypeStruct(i2d.shape, i2d.dtype),
        ),
        grid_spec=pltpu.PrefetchScalarGridSpec(
            num_scalar_prefetch=0,
            grid=grid,
            in_specs=[
                pl.BlockSpec((tu, _LANES), u_map),
                pl.BlockSpec((ti, _LANES), i_map),
            ],
            out_specs=[
                pl.BlockSpec((tu, _LANES), u_map),
                pl.BlockSpec((ti, _LANES), i_map),
            ],
        ),
        compiler_params=pltpu.CompilerParams(
            dimension_semantics=("parallel",),
            vmem_limit_bytes=int(vmem_limit),
        ),
    )(u2d, i2d)

    return (_from_lane_dense(uo2d, u_total, user_emb.shape),
            _from_lane_dense(io2d, i_total, item_emb.shape))


# --------------------------------------------------------------------------- #
# Module wrapper                                                               #
# --------------------------------------------------------------------------- #
def mf_forward(user_emb, item_emb):
    """Pallas equivalent of Matrix_Factorization.forward().

    forward() is a pure identity over the parameters, so the optimal
    implementation moves zero bytes: return the tables directly.
    """
    return user_emb, item_emb


class MatrixFactorizationPallas:
    """JAX/Pallas port of Matrix_Factorization."""

    def __init__(self, user_num, item_num, emb_size, key):
        ku, ki = jax.random.split(key)
        self.user_emb = _xavier_uniform(ku, (user_num, emb_size))
        self.item_emb = _xavier_uniform(ki, (item_num, emb_size))

    def forward(self):
        # Matches PyTorch exactly: returns the parameter tensors, no copy.
        return mf_forward(self.user_emb, self.item_emb)

    def forward_materialized(self):
        # Optional: produce fresh output buffers via the fused Pallas copy.
        return mf_copy(self.user_emb, self.item_emb)


if __name__ == "__main__":
    key = jax.random.PRNGKey(0)

    user_num, item_num, emb_size = 64, 128, 32
    model = MatrixFactorizationPallas(user_num, item_num, emb_size, key)

    # Zero-copy forward (the actual module semantics).
    u_fast, i_fast = model.forward()
    assert u_fast is model.user_emb and i_fast is model.item_emb

    # Pallas kernel path: fused tiled lane-dense copy of both tables.
    user_out, item_out = model.forward_materialized()
    jax.block_until_ready((user_out, item_out))

    assert user_out.shape == (user_num, emb_size)
    assert item_out.shape == (item_num, emb_size)
    assert user_out.dtype == model.user_emb.dtype
    assert item_out.dtype == model.item_emb.dtype
    assert jnp.array_equal(user_out, model.user_emb)
    assert jnp.array_equal(item_out, model.item_emb)

    # Robustness: element counts not divisible by 8 or 128 (padded lane-dense).
    model_odd = MatrixFactorizationPallas(10, 7, 5, jax.random.PRNGKey(1))
    uo, io = model_odd.forward_materialized()
    jax.block_until_ready((uo, io))
    assert jnp.array_equal(uo, model_odd.user_emb)
    assert jnp.array_equal(io, model_odd.item_emb)

    # Larger, unequal tables exercise the tiled / clamped-index path.
    model_big = MatrixFactorizationPallas(9000, 3000, 64, jax.random.PRNGKey(2))
    ub, ib = model_big.forward_materialized()
    jax.block_until_ready((ub, ib))
    assert jnp.array_equal(ub, model_big.user_emb)
    assert jnp.array_equal(ib, model_big.item_emb)

    print("KERNEL_OK")
</pallas_src>

<mosaic_0001>
module attributes {stable_mosaic.version = 11 : i64} {
  func.func @_fused_copy_kernel(%arg0: i32, %arg1: memref<16x128xf32, #tpu.memory_space<vmem>>, %arg2: memref<32x128xf32, #tpu.memory_space<vmem>>, %arg3: memref<16x128xf32, #tpu.memory_space<vmem>>, %arg4: memref<32x128xf32, #tpu.memory_space<vmem>>) attributes {dimension_semantics = [#tpu.dimension_semantics<parallel>], iteration_bounds = array<i64: 1>, scalar_prefetch = 0 : i64, scratch_operands = 0 : i64, tpu.core_type = #tpu.core_type<tc>, window_params = [{transform_indices = @transform_0, window_bounds = array<i64: 16, 128>}, {transform_indices = @transform_1, window_bounds = array<i64: 32, 128>}, {transform_indices = @transform_2, window_bounds = array<i64: 16, 128>}, {transform_indices = @transform_3, window_bounds = array<i64: 32, 128>}]} {
    %c0 = arith.constant 0 : index
    %c0_0 = arith.constant 0 : index
    %0 = vector.load %arg1[%c0, %c0_0] : memref<16x128xf32, #tpu.memory_space<vmem>>, vector<16x128xf32>
    %c0_1 = arith.constant 0 : index
    %c0_2 = arith.constant 0 : index
    %1 = vector.load %arg3[%c0_1, %c0_2] : memref<16x128xf32, #tpu.memory_space<vmem>>, vector<16x128xf32>
    tpu.vector_store %arg3[%c0_1, %c0_2], %0 {strides = array<i32>} : memref<16x128xf32, #tpu.memory_space<vmem>>, vector<16x128xf32>,
    %c0_3 = arith.constant 0 : index
    %c0_4 = arith.constant 0 : index
    %2 = vector.load %arg2[%c0_3, %c0_4] : memref<32x128xf32, #tpu.memory_space<vmem>>, vector<32x128xf32>
    %c0_5 = arith.constant 0 : index
    %c0_6 = arith.constant 0 : index
    %3 = vector.load %arg4[%c0_5, %c0_6] : memref<32x128xf32, #tpu.memory_space<vmem>>, vector<32x128xf32>
    tpu.vector_store %arg4[%c0_5, %c0_6], %2 {strides = array<i32>} : memref<32x128xf32, #tpu.memory_space<vmem>>, vector<32x128xf32>,
    return
  }
  func.func @transform_0(%arg0: i32) -> (i32, i32) {
    %c0_i32 = arith.constant 0 : i32
    %0 = arith.minsi %arg0, %c0_i32 : i32
    %c0_i32_0 = arith.constant 0 : i32
    %c0_i32_1 = arith.constant 0 : i32
    return %0, %c0_i32_0 : i32, i32
  }
  func.func @transform_1(%arg0: i32) -> (i32, i32) {
    %c0_i32 = arith.constant 0 : i32
    %0 = arith.minsi %arg0, %c0_i32 : i32
    %c0_i32_0 = arith.constant 0 : i32
    %c0_i32_1 = arith.constant 0 : i32
    return %0, %c0_i32_0 : i32, i32
  }
  func.func @transform_2(%arg0: i32) -> (i32, i32) {
    %c0_i32 = arith.constant 0 : i32
    %0 = arith.minsi %arg0, %c0_i32 : i32
    %c0_i32_0 = arith.constant 0 : i32
    %c0_i32_1 = arith.constant 0 : i32
    return %0, %c0_i32_0 : i32, i32
  }
  func.func @transform_3(%arg0: i32) -> (i32, i32) {
    %c0_i32 = arith.constant 0 : i32
    %0 = arith.minsi %arg0, %c0_i32 : i32
    %c0_i32_0 = arith.constant 0 : i32
    %c0_i32_1 = arith.constant 0 : i32
    return %0, %c0_i32_0 : i32, i32
  }
}

</mosaic_0001>

<bundles_post_ra>
// kernel: tpu_custom_call.1
= control target key start
LH: loop header
LB: loop body
LE: loop exit
PB: predicated region body
PF: predicated region fallthrough
CT: control target
= control target key end

     0   :  { %9 = vsyncpa [#allocation3], 0  ;;  %s291_s0 = inlined_call_operand.hbm [shape: f32[16,128], index: 0, kind: input, shape index: {}]   ;;  %s292_s1 = inlined_call_operand.hbm [shape: f32[32,128], index: 1, kind: input, shape index: {}]   ;;  %s293_s2 = inlined_call_operand.hbm [shape: f32[16,128], index: 2, kind: output, shape index: {0}]   ;;  %s294_s3 = inlined_call_operand.hbm [shape: f32[32,128], index: 3, kind: output, shape index: {1}]  }
   0x1   :  { %10 = vsyncpa [#allocation6], 0 }
   0x2   :  { %11 = vsyncpa [#allocation4], 0 }
   0x3   :  { %12 = vsyncpa [#allocation9], 0  ;;  %s191_s12 = smov [#allocation2]   ;;  %s95_s16 = scalar_lea.hbm %s291_s0, 256 }
   0x4   :  { %s18_s13 = sshll.u32 %s191_s12, 4  ;;  %p96_p0 = scmp.ne.s32.totalorder %s291_s0, %s95_s16  ;;  %s19_s13 = int_to_ptr.vmem [resolvable:$true] %s18_s13 }
   0x5   :  { %p99_p1 = scmp.lt.u32.totalorder %s95_s16, %s291_s0 }
   0x7   :  { %p101_p2 = pnand %p99_p1, %p96_p0 }
   0x9   :  { %104 = shalt.err (!%p101_p2)
}
   0xa   :  { %s105_s21 = scalar_lea.vmem %s19_s13, 256  ;;  %p110_p4 = scmp.lt.s32.totalorder %s19_s13, %s19_s13 }
   0xb   :  { %p106_p3 = scmp.ne.s32.totalorder %s19_s13, %s105_s21  ;;  %p111_p5 = scmp.lt.s32.totalorder %s105_s21, %s105_s21 }
   0xd   :  { %p112_p6 = por %p111_p5, %p110_p4 }
   0xf   :  { %p113_p7 = pnand %p112_p6, %p106_p3 }
  0x11   :  { %116 = shalt.err (!%p113_p7)
}
  0x12   :  { %s192_s22 = smov 128   ;;  %s193_s23 = smov 8  }
  0x13   :  { %24 = dma.hbm_to_vmem [thread:$0]  %s291_s0, 256, %s19_s13, [#allocation3], %s192_s22, %s192_s22, %s193_s23  }
  0x14   :  { %s194_s26 = smov [#allocation5]   ;;  %s117_s30 = scalar_lea.hbm %s292_s1, 512 }
  0x15   :  { %s30_s27 = sshll.u32 %s194_s26, 4  ;;  %p118_p8 = scmp.ne.s32.totalorder %s292_s1, %s117_s30  ;;  %s31_s27 = int_to_ptr.vmem [resolvable:$true] %s30_s27 }
  0x16   :  { %p121_p9 = scmp.lt.u32.totalorder %s117_s30, %s292_s1 }
  0x18   :  { %p123_p10 = pnand %p121_p9, %p118_p8 }
  0x1a   :  { %126 = shalt.err (!%p123_p10)
}
  0x1b   :  { %s127_s8 = scalar_lea.vmem %s31_s27, 512  ;;  %p132_p12 = scmp.lt.s32.totalorder %s31_s27, %s31_s27 }
  0x1c   :  { %p128_p11 = scmp.ne.s32.totalorder %s31_s27, %s127_s8  ;;  %p133_p13 = scmp.lt.s32.totalorder %s127_s8, %s127_s8 }
  0x1e   :  { %p134_p0 = por %p133_p13, %p132_p12 }
  0x20   :  { %p135_p1 = pnand %p134_p0, %p128_p11 }
  0x22   :  { %138 = shalt.err (!%p135_p1)
}
  0x23   :  { %36 = dma.hbm_to_vmem [thread:$0]  %s292_s1, 512, %s31_s27, [#allocation6], %s192_s22, %s192_s22, %s193_s23  }
  0x24   :  { %183 = dma.done.wait [#allocation3], 256  }
  0x25   :  { %184 = vsyncadd [#allocation3], 4294967040 }
  0x26   :  { %185 = dma.done.wait [#allocation6], 512  }
  0x27   :  { %186 = vsyncadd [#allocation6], 4294966784  ;;  %s195_s10 = smov [#allocation7]   ;;  %s196_s12 = smov [#allocation8]   ;;  %v43_v0 = vld [vmem:[#allocation2] sm:$0xff]  ;;  %v44_v1 = vld [vmem:[#allocation2 + $0x8] sm:$0xff] }
  0x28   :  { %s60_s11 = sshll.u32 %s195_s10, 4  ;;  %s72_s13 = sshll.u32 %s196_s12, 4  ;;  %v47_v2 = vld [vmem:[#allocation5] sm:$0xff]  ;;  %45 = vst [vmem:[#allocation7] sm:$0xff] %v43_v0  ;;  %46 = vst [vmem:[#allocation7 + $0x8] sm:$0xff] %v44_v1  ;;  %v48_v3 = vld [vmem:[#allocation5 + $0x8] sm:$0xff]  ;;  %s247_s11 = int_to_ptr.vmem [resolvable:$true] %s60_s11  ;;  %s249_s13 = int_to_ptr.vmem [resolvable:$true] %s72_s13 }
  0x29   :  { %51 = vst [vmem:[#allocation8] sm:$0xff] %v47_v2  ;;  %v49_v4 = vld [vmem:[#allocation5 + $0x10] sm:$0xff]  ;;  %v50_v5 = vld [vmem:[#allocation5 + $0x18] sm:$0xff]  ;;  %52 = vst [vmem:[#allocation8 + $0x8] sm:$0xff] %v48_v3  ;;  %s139_s1 = scalar_lea.vmem %s247_s11, 256  ;;  %p144_p3 = scmp.lt.s32.totalorder %s247_s11, %s247_s11 }
  0x2a   :  { %53 = vst [vmem:[#allocation8 + $0x10] sm:$0xff] %v49_v4  ;;  %54 = vst [vmem:[#allocation8 + $0x18] sm:$0xff] %v50_v5  ;;  %p140_p2 = scmp.ne.s32.totalorder %s247_s11, %s139_s1  ;;  %p145_p4 = scmp.lt.s32.totalorder %s139_s1, %s139_s1 }
  0x2c   :  { %p146_p5 = por %p145_p4, %p144_p3 }
  0x2e   :  { %p147_p6 = pnand %p146_p5, %p140_p2 }
  0x30   :  { %150 = shalt.err (!%p147_p6)
}
  0x31   :  { %s151_s16 = scalar_lea.hbm %s293_s2, 256 }
  0x32   :  { %p152_p7 = scmp.ne.s32.totalorder %s293_s2, %s151_s16  ;;  %p155_p8 = scmp.lt.u32.totalorder %s151_s16, %s293_s2 }
  0x34   :  { %p157_p9 = pnand %p155_p8, %p152_p7 }
  0x36   :  { %160 = shalt.err (!%p157_p9)
}
  0x37   :  { %66 = dma.vmem_to_hbm [thread:$0]  %s247_s11, 256, %s293_s2, [#allocation4], %s192_s22, %s192_s22, %s193_s23  }
  0x38   :  { %s161_s25 = scalar_lea.vmem %s249_s13, 512  ;;  %p166_p11 = scmp.lt.s32.totalorder %s249_s13, %s249_s13 }
  0x39   :  { %p162_p10 = scmp.ne.s32.totalorder %s249_s13, %s161_s25  ;;  %p167_p12 = scmp.lt.s32.totalorder %s161_s25, %s161_s25 }
  0x3b   :  { %p168_p13 = por %p167_p12, %p166_p11 }
  0x3d   :  { %p169_p0 = pnand %p168_p13, %p162_p10 }
  0x3f   :  { %172 = shalt.err (!%p169_p0)
}
  0x40   :  { %s173_s28 = scalar_lea.hbm %s294_s3, 512 }
  0x41   :  { %p174_p1 = scmp.ne.s32.totalorder %s294_s3, %s173_s28  ;;  %p177_p2 = scmp.lt.u32.totalorder %s173_s28, %s294_s3 }
  0x43   :  { %p179_p3 = pnand %p177_p2, %p174_p1 }
  0x45   :  { %182 = shalt.err (!%p179_p3)
}
  0x46   :  { %78 = dma.vmem_to_hbm [thread:$0]  %s249_s13, 512, %s294_s3, [#allocation9], %s192_s22, %s192_s22, %s193_s23  }
  0x47   :  { %187 = dma.done.wait [#allocation4], 256  }
  0x48   :  { %188 = vsyncadd [#allocation4], 4294967040 }
  0x49   :  { %189 = dma.done.wait [#allocation9], 512  }
  0x4a   :  { %190 = vsyncadd [#allocation9], 4294966784 }
  0x4b   :  { %85 = vsyncpa [#allocation3], 1 }
  0x4c   :  { %86 = vsyncpa [#allocation6], 1 }
  0x4d   :  { %87 = vsyncpa [#allocation4], 1 }
  0x4e   :  { %88 = vsyncpa [#allocation9], 1 }

</bundles_post_ra>
